<compile_context>
chip_gen: v5e
topology: v5e:2x2
jax: 0.10.0
libtpu: 0.0.40
codegen_flags: <defaults>
</compile_context>

<pallas_src>
import functools

import jax
import jax.numpy as jnp
from jax.experimental import pallas as pl
from jax.experimental.pallas import tpu as pltpu

EPS = 1e-5
_VMEM_LIMIT = 32 * 1024 * 1024          # explicit scoped-VMEM limit, safe on v5e/v6e/v7x
_FUSED_SLAB_BUDGET = 12 * 1024 * 1024   # per-sample (in + out, double-buffered) budget


# ------------------------------- Pallas kernels -------------------------------

def _se_fused_kernel(x_ref, w1_ref, b1_ref, w2_ref, b2_ref, o_ref, *, inv_hw):
    """One batch sample per grid step: GAP -> fc1(BN-folded)+ReLU -> fc2+bias
    -> sigmoid -> gating multiply, entirely in VMEM."""
    x = x_ref[0]                                                  # (C, HW) f32
    g = jnp.sum(x, axis=1, keepdims=True) * inv_hw                # (C, 1)  GAP
    h = jnp.dot(w1_ref[...], g, preferred_element_type=jnp.float32) + b1_ref[...]
    h = jnp.maximum(h, 0.0)                                       # (rd, 1)
    s = jnp.dot(w2_ref[...], h, preferred_element_type=jnp.float32) + b2_ref[...]
    s = jax.nn.sigmoid(s)                                         # (C, 1)
    o_ref[...] = (x * s)[None].astype(o_ref.dtype)                # broadcast over lanes


def _se_gates_kernel(x_ref, w1_ref, b1_ref, w2_ref, b2_ref, g_ref, acc_ref, *, inv_hw):
    """Tiled GAP (reduction over spatial tiles) + gate computation at the last tile."""
    t = pl.program_id(1)

    @pl.when(t == 0)
    def _():
        acc_ref[...] = jnp.zeros_like(acc_ref)

    acc_ref[...] += jnp.sum(x_ref[0], axis=1, keepdims=True)      # (C, 1) partial sum

    @pl.when(t == pl.num_programs(1) - 1)
    def _():
        g = acc_ref[...] * inv_hw                                 # (C, 1) mean
        h = jnp.dot(w1_ref[...], g, preferred_element_type=jnp.float32) + b1_ref[...]
        h = jnp.maximum(h, 0.0)                                   # (rd, 1)
        s = jnp.dot(w2_ref[...], h, preferred_element_type=jnp.float32) + b2_ref[...]
        g_ref[...] = jax.nn.sigmoid(s)[None].astype(g_ref.dtype)  # (1, C, 1)


def _se_scale_kernel(x_ref, g_ref, o_ref):
    o_ref[...] = (x_ref[...] * g_ref[...]).astype(o_ref.dtype)    # (1,C,thw) * (1,C,1)


# ------------------------------- pallas_call wrappers -------------------------------

def _se_fused(x3, w1, b1, w2, b2):
    N, C, HW = x3.shape
    rd = w1.shape[0]
    kern = functools.partial(_se_fused_kernel, inv_hw=1.0 / HW)
    return pl.pallas_call(
        kern,
        out_shape=jax.ShapeDtypeStruct((N, C, HW), x3.dtype),
        grid_spec=pltpu.PrefetchScalarGridSpec(
            num_scalar_prefetch=0,
            grid=(N,),
            in_specs=[
                pl.BlockSpec((1, C, HW), lambda n: (n, 0, 0)),
                pl.BlockSpec((rd, C), lambda n: (0, 0)),
                pl.BlockSpec((rd, 1), lambda n: (0, 0)),
                pl.BlockSpec((C, rd), lambda n: (0, 0)),
                pl.BlockSpec((C, 1), lambda n: (0, 0)),
            ],
            out_specs=pl.BlockSpec((1, C, HW), lambda n: (n, 0, 0)),
        ),
        compiler_params=pltpu.CompilerParams(
            dimension_semantics=("parallel",),
            vmem_limit_bytes=_VMEM_LIMIT,
        ),
    )(x3, w1, b1, w2, b2)


def _se_gates(x3, w1, b1, w2, b2, thw):
    N, C, HW = x3.shape
    rd = w1.shape[0]
    T = HW // thw
    kern = functools.partial(_se_gates_kernel, inv_hw=1.0 / HW)
    return pl.pallas_call(
        kern,
        out_shape=jax.ShapeDtypeStruct((N, C, 1), jnp.float32),
        grid_spec=pltpu.PrefetchScalarGridSpec(
            num_scalar_prefetch=0,
            grid=(N, T),
            in_specs=[
                pl.BlockSpec((1, C, thw), lambda n, t: (n, 0, t)),
                pl.BlockSpec((rd, C), lambda n, t: (0, 0)),
                pl.BlockSpec((rd, 1), lambda n, t: (0, 0)),
                pl.BlockSpec((C, rd), lambda n, t: (0, 0)),
                pl.BlockSpec((C, 1), lambda n, t: (0, 0)),
            ],
            out_specs=pl.BlockSpec((1, C, 1), lambda n, t: (n, 0, 0)),
            scratch_shapes=[pltpu.VMEM((C, 1), jnp.float32)],
        ),
        compiler_params=pltpu.CompilerParams(
            dimension_semantics=("parallel", "arbitrary"),
            vmem_limit_bytes=_VMEM_LIMIT,
        ),
    )(x3, w1, b1, w2, b2)


def _se_scale(x3, gates, thw):
    N, C, HW = x3.shape
    T = HW // thw
    return pl.pallas_call(
        _se_scale_kernel,
        out_shape=jax.ShapeDtypeStruct((N, C, HW), x3.dtype),
        grid_spec=pltpu.PrefetchScalarGridSpec(
            num_scalar_prefetch=0,
            grid=(N, T),
            in_specs=[
                pl.BlockSpec((1, C, thw), lambda n, t: (n, 0, t)),
                pl.BlockSpec((1, C, 1), lambda n, t: (n, 0, 0)),
            ],
            out_specs=pl.BlockSpec((1, C, thw), lambda n, t: (n, 0, t)),
        ),
        compiler_params=pltpu.CompilerParams(
            dimension_semantics=("parallel", "parallel"),
            vmem_limit_bytes=_VMEM_LIMIT,
        ),
    )(x3, gates)


# --------------------------------- parameters ---------------------------------

def _fold_params(params):
    """Fold eval-mode BN scale into the fc1 weight; keep only additive terms."""
    rd, C = params["fc1_w"].shape[:2]
    scale = params["bn_gamma"] / jnp.sqrt(params["bn_var"] + EPS)       # (rd,)
    shift = params["bn_beta"] - params["bn_mean"] * scale               # (rd,)
    w1 = params["fc1_w"].reshape(rd, C) * scale[:, None]                # (rd, C) BN-folded
    b1 = shift.reshape(rd, 1)
    w2 = params["fc2_w"].reshape(C, rd)                                 # (C, rd)
    b2 = params["fc2_b"].reshape(C, 1)
    return w1, b1, w2, b2


def _choose_spatial_tile(hw, c, itemsize, budget):
    """Largest lane-dense (multiple-of-128) divisor of hw whose in+out
    double-buffered tiles fit `budget`; best-effort otherwise."""
    cands = [d for d in range(hw, 0, -1) if hw % d == 0 and d % 128 == 0]
    if not cands:
        return hw                               # lane dim must equal full dim then
    for d in cands:
        if 4 * d * c * itemsize <= budget:
            return d
    return cands[-1]


# --------------------------------- forward ---------------------------------

def se_forward(params, x_nchw, *, vmem_budget_bytes=_FUSED_SLAB_BUDGET):
    """y = x * sigmoid(fc2(relu(bn(fc1(gap(x)))))), x in NCHW (PyTorch layout)."""
    N, C, H, W = x_nchw.shape
    HW = H * W
    x3 = x_nchw.reshape(N, C, HW)               # free reshape, stays NCHW-native
    w1, b1, w2, b2 = _fold_params(params)

    itemsize = x3.dtype.itemsize
    slab = 4 * C * HW * itemsize                # per-sample in+out, double-buffered
    if slab <= vmem_budget_bytes:
        out3 = _se_fused(x3, w1, b1, w2, b2)
    else:
        thw = _choose_spatial_tile(HW, C, itemsize, vmem_budget_bytes)
        gates = _se_gates(x3, w1, b1, w2, b2, thw)
        out3 = _se_scale(x3, gates, thw)
    return out3.reshape(N, C, H, W)


def se_ref(params, x):
    """Pure-JAX reference (mirrors the PyTorch module in eval mode)."""
    N, C, H, W = x.shape
    rd = params["fc1_w"].shape[0]
    g = jnp.mean(x, axis=(2, 3))                                        # (N, C)
    h = g @ params["fc1_w"].reshape(rd, C).T
    scale = params["bn_gamma"] / jnp.sqrt(params["bn_var"] + EPS)
    shift = params["bn_beta"] - params["bn_mean"] * scale
    h = jnp.maximum(h * scale + shift, 0.0)
    s = jax.nn.sigmoid(h @ params["fc2_w"].reshape(C, rd).T + params["fc2_b"])
    return x * s[:, :, None, None]


def init_se_params(key, in_channels, rd_ratio=4):
    rd = in_channels // rd_ratio
    ks = jax.random.split(key, 7)
    return {
        "fc1_w": 0.1 * jax.random.normal(ks[0], (rd, in_channels, 1, 1), jnp.float32),
        "bn_gamma": 1.0 + 0.1 * jax.random.normal(ks[1], (rd,), jnp.float32),
        "bn_beta": 0.1 * jax.random.normal(ks[2], (rd,), jnp.float32),
        "bn_mean": 0.1 * jax.random.normal(ks[3], (rd,), jnp.float32),
        "bn_var": 1.0 + 0.1 * jax.random.uniform(ks[4], (rd,), jnp.float32),
        "fc2_w": 0.1 * jax.random.normal(ks[5], (in_channels, rd, 1, 1), jnp.float32),
        "fc2_b": 0.1 * jax.random.normal(ks[6], (in_channels,), jnp.float32),
    }


# ----------------------------------- main -----------------------------------

if __name__ == "__main__":
    key = jax.random.PRNGKey(0)
    kx, kp = jax.random.split(key)

    C = 128                                        # SE(in_channels=128, rd_ratio=4) -> rd=32
    x = jax.random.normal(kx, (2, C, 16, 16), jnp.float32)   # NCHW
    params = init_se_params(kp, C, rd_ratio=4)

    ref = se_ref(params, x)

    # Fully fused single-kernel path.
    fwd = jax.jit(se_forward)
    out = jax.block_until_ready(fwd(params, x))
    assert out.shape == x.shape, out.shape
    assert bool(jnp.all(jnp.isfinite(out)))
    assert bool(jnp.allclose(out, ref, rtol=1e-5, atol=1e-5)), \
        float(jnp.max(jnp.abs(out - ref)))

    # Spatially tiled fallback path (forced by a tiny budget) - same numerics.
    fwd_tiled = jax.jit(functools.partial(se_forward, vmem_budget_bytes=64 * 1024))
    out_tiled = jax.block_until_ready(fwd_tiled(params, x))
    assert bool(jnp.allclose(out_tiled, ref, rtol=1e-5, atol=1e-5)), \
        float(jnp.max(jnp.abs(out_tiled - ref)))

    print("KERNEL_OK")
</pallas_src>

<mosaic_0001>
module attributes {stable_mosaic.version = 11 : i64} {
  func.func @_se_fused_kernel(%arg0: i32, %arg1: memref<1x128x256xf32, #tpu.memory_space<vmem>>, %arg2: memref<32x128xf32, #tpu.memory_space<vmem>>, %arg3: memref<32x1xf32, #tpu.memory_space<vmem>>, %arg4: memref<128x32xf32, #tpu.memory_space<vmem>>, %arg5: memref<128x1xf32, #tpu.memory_space<vmem>>, %arg6: memref<1x128x256xf32, #tpu.memory_space<vmem>>) attributes {dimension_semantics = [#tpu.dimension_semantics<parallel>], iteration_bounds = array<i64: 2>, scalar_prefetch = 0 : i64, scratch_operands = 0 : i64, tpu.core_type = #tpu.core_type<tc>, window_params = [{transform_indices = @transform_0, window_bounds = array<i64: 1, 128, 256>}, {pipeline_mode = #tpu.pipeline_mode<synchronous>, transform_indices = @transform_1, window_bounds = array<i64: 32, 128>}, {pipeline_mode = #tpu.pipeline_mode<synchronous>, transform_indices = @transform_2, window_bounds = array<i64: 32, 1>}, {pipeline_mode = #tpu.pipeline_mode<synchronous>, transform_indices = @transform_3, window_bounds = array<i64: 128, 32>}, {pipeline_mode = #tpu.pipeline_mode<synchronous>, transform_indices = @transform_4, window_bounds = array<i64: 128, 1>}, {transform_indices = @transform_5, window_bounds = array<i64: 1, 128, 256>}]} {
    %c0 = arith.constant 0 : index
    %c0_0 = arith.constant 0 : index
    %c0_1 = arith.constant 0 : index
    %0 = vector.load %arg1[%c0, %c0_0, %c0_1] : memref<1x128x256xf32, #tpu.memory_space<vmem>>, vector<1x128x256xf32>
    %1 = vector.shape_cast %0 : vector<1x128x256xf32> to vector<128x256xf32>
    %cst = arith.constant dense<0.000000e+00> : vector<128xf32>
    %2 = vector.multi_reduction <add>, %1, %cst [1] : vector<128x256xf32> to vector<128xf32>
    %3 = vector.shape_cast %2 : vector<128xf32> to vector<128x1xf32>
    %cst_2 = arith.constant 3.906250e-03 : f32
    %4 = vector.broadcast %cst_2 : f32 to vector<128x1xf32>
    %5 = arith.mulf %3, %4 : vector<128x1xf32>
    %c0_3 = arith.constant 0 : index
    %c0_4 = arith.constant 0 : index
    %6 = vector.load %arg2[%c0_3, %c0_4] : memref<32x128xf32, #tpu.memory_space<vmem>>, vector<32x128xf32>
    %cst_5 = arith.constant dense<0.000000e+00> : vector<32x1xf32>
    %7 = tpu.matmul %6, %5, %cst_5 {dimension_numbers = #tpu.dot_dimension_numbers<[1], [0], [0], [1], [0, 0, 1, 1], [], []>} : vector<32x128xf32>, vector<128x1xf32>, vector<32x1xf32> -> vector<32x1xf32>
    %c0_6 = arith.constant 0 : index
    %c0_7 = arith.constant 0 : index
    %8 = vector.load %arg3[%c0_6, %c0_7] : memref<32x1xf32, #tpu.memory_space<vmem>>, vector<32x1xf32>
    %9 = arith.addf %7, %8 : vector<32x1xf32>
    %cst_8 = arith.constant 0.000000e+00 : f32
    %10 = vector.broadcast %cst_8 : f32 to vector<32x1xf32>
    %11 = arith.maximumf %9, %10 : vector<32x1xf32>
    %c0_9 = arith.constant 0 : index
    %c0_10 = arith.constant 0 : index
    %12 = vector.load %arg4[%c0_9, %c0_10] : memref<128x32xf32, #tpu.memory_space<vmem>>, vector<128x32xf32>
    %cst_11 = arith.constant dense<0.000000e+00> : vector<128x1xf32>
    %13 = tpu.matmul %12, %11, %cst_11 {dimension_numbers = #tpu.dot_dimension_numbers<[1], [0], [0], [1], [0, 0, 1, 1], [], []>} : vector<128x32xf32>, vector<32x1xf32>, vector<128x1xf32> -> vector<128x1xf32>
    %c0_12 = arith.constant 0 : index
    %c0_13 = arith.constant 0 : index
    %14 = vector.load %arg5[%c0_12, %c0_13] : memref<128x1xf32, #tpu.memory_space<vmem>>, vector<128x1xf32>
    %15 = arith.addf %13, %14 : vector<128x1xf32>
    %16 = arith.negf %15 : vector<128x1xf32>
    %17 = math.exp %16 : vector<128x1xf32>
    %cst_14 = arith.constant 1.000000e+00 : f32
    %18 = vector.broadcast %cst_14 : f32 to vector<128x1xf32>
    %19 = arith.addf %18, %17 : vector<128x1xf32>
    %20 = arith.divf %18, %19 : vector<128x1xf32>
    %21 = vector.broadcast %20 : vector<128x1xf32> to vector<128x256xf32>
    %22 = arith.mulf %1, %21 : vector<128x256xf32>
    %23 = vector.shape_cast %22 : vector<128x256xf32> to vector<1x128x256xf32>
    %c0_15 = arith.constant 0 : index
    %c0_16 = arith.constant 0 : index
    %c0_17 = arith.constant 0 : index
    %24 = vector.load %arg6[%c0_15, %c0_16, %c0_17] : memref<1x128x256xf32, #tpu.memory_space<vmem>>, vector<1x128x256xf32>
    tpu.vector_store %arg6[%c0_15, %c0_16, %c0_17], %23 {strides = array<i32>} : memref<1x128x256xf32, #tpu.memory_space<vmem>>, vector<1x128x256xf32>,
    return
  }
  func.func @transform_0(%arg0: i32) -> (i32, i32, i32) {
    %c0_i32 = arith.constant 0 : i32
    %c0_i32_0 = arith.constant 0 : i32
    %c0_i32_1 = arith.constant 0 : i32
    return %arg0, %c0_i32, %c0_i32_0 : i32, i32, i32
  }
  func.func @transform_1(%arg0: i32) -> (i32, i32) {
    %c0_i32 = arith.constant 0 : i32
    %c0_i32_0 = arith.constant 0 : i32
    %c0_i32_1 = arith.constant 0 : i32
    return %c0_i32, %c0_i32_0 : i32, i32
  }
  func.func @transform_2(%arg0: i32) -> (i32, i32) {
    %c0_i32 = arith.constant 0 : i32
    %c0_i32_0 = arith.constant 0 : i32
    %c0_i32_1 = arith.constant 0 : i32
    return %c0_i32, %c0_i32_0 : i32, i32
  }
  func.func @transform_3(%arg0: i32) -> (i32, i32) {
    %c0_i32 = arith.constant 0 : i32
    %c0_i32_0 = arith.constant 0 : i32
    %c0_i32_1 = arith.constant 0 : i32
    return %c0_i32, %c0_i32_0 : i32, i32
  }
  func.func @transform_4(%arg0: i32) -> (i32, i32) {
    %c0_i32 = arith.constant 0 : i32
    %c0_i32_0 = arith.constant 0 : i32
    %c0_i32_1 = arith.constant 0 : i32
    return %c0_i32, %c0_i32_0 : i32, i32
  }
  func.func @transform_5(%arg0: i32) -> (i32, i32, i32) {
    %c0_i32 = arith.constant 0 : i32
    %c0_i32_0 = arith.constant 0 : i32
    %c0_i32_1 = arith.constant 0 : i32
    return %arg0, %c0_i32, %c0_i32_0 : i32, i32, i32
  }
}

</mosaic_0001>

<bundles_post_ra>
// kernel: se_forward.1
= control target key start
LH: loop header
LB: loop body
LE: loop exit
PB: predicated region body
PF: predicated region fallthrough
CT: control target
= control target key end

     0   :  { %s1207_s18 = smov 0   ;;  %s1784_s0 = inlined_call_operand.vmem [shape: f32[2,128,256], index: 0, kind: input, shape index: {}]   ;;  %s1785_s1 = inlined_call_operand.vmem [shape: f32[32,128], index: 1, kind: input, shape index: {}]   ;;  %s1786_s2 = inlined_call_operand.vmem [shape: f32[32,1], index: 2, kind: input, shape index: {}]   ;;  %s1787_s3 = inlined_call_operand.vmem [shape: f32[128,32], index: 3, kind: input, shape index: {}]   ;;  %s1788_s4 = inlined_call_operand.vmem [shape: f32[128,1], index: 4, kind: input, shape index: {}]   ;;  %s1789_s5 = inlined_call_operand.vmem [shape: f32[2,128,256], index: 5, kind: output, shape index: {}]  }
   0x1 LB: > { %s1011_s19 = sadd.s32 4294967295, %s1174_s18   ;;  %p1015_p0 = scmp.ge.s32.totalorder %s1174_s18, 1  ;;  %s1174_s18 = sphi %s1207_s18, %s15_s18  }
   0x2   : > { %p187_p1 = scmp.lt.s32.totalorder %s1174_s18, 3 }
   0x4   : > { %p188_p2 = pnand %p1015_p0, %p187_p1 }
   0x5   : > { %p215_p3 = scmp.lt.s32.totalorder (!%p188_p2), %s1011_s19, 1 }
   0x6   : > { %191 = sbr.rel (%p188_p2) target bundleno = 668 (0x29c), region = 40 }
   0xb   : > { %s1817_s19 = smov (!%p215_p3, %s1011_s19), 1  ;;  %vm394_vm0 = vcmask 261120  }
   0xc   : > { %s1054_s20 = sshll.u32 %s1817_s19, 8 }
   0xd   : > { %s1223_s23 = scalar_lea.vmem %s1784_s0, %s1054_s20  ;;  %s1715_s21 = scalar_lea.vmem %s1789_s5, %s1054_s20 }
   0xe   : > { %v255_v0 = vld [vmem:[%s1223_s23 + $0xf0] sm:$0xff]  ;;  %v256_v1 = vld [vmem:[%s1223_s23 + $0xf8] sm:$0xff]  ;;  %v253_v9 = vld [vmem:[%s1223_s23 + $0xe0] sm:$0xff] }
   0xf   : > { %v251_v2 = vld [vmem:[%s1223_s23 + $0xd0] sm:$0xff]  ;;  %v302_v3 = vadd.f32 %v256_v1, %v255_v0  ;;  %v252_v4 = vld [vmem:[%s1223_s23 + $0xd8] sm:$0xff]  ;;  %v254_v10 = vld [vmem:[%s1223_s23 + $0xe8] sm:$0xff] }
  0x10   : > { %v247_v5 = vld [vmem:[%s1223_s23 + $0xb0] sm:$0xff]  ;;  %v248_v6 = vld [vmem:[%s1223_s23 + $0xb8] sm:$0xff]  ;;  %v296_v7 = vadd.f32 %v252_v4, %v251_v2  ;;  %v249_v11 = vld [vmem:[%s1223_s23 + $0xc0] sm:$0xff]  ;;  %v299_v15 = vadd.f32 %v254_v10, %v253_v9 }
  0x11   : > { %v290_v8 = vadd.f32 %v248_v6, %v247_v5  ;;  %303 = vadd.xlane.f32.xlu0 %v302_v3  ;;  %v250_v12 = vld [vmem:[%s1223_s23 + $0xc8] sm:$0xff]  ;;  %v245_v13 = vld [vmem:[%s1223_s23 + $0xa0] sm:$0xff]  ;;  %v243_v18 = vld [vmem:[%s1223_s23 + $0x90] sm:$0xff] }
  0x12   : > { %297 = vadd.xlane.f32.xlu1 %v296_v7  ;;  %v246_v14 = vld [vmem:[%s1223_s23 + $0xa8] sm:$0xff]  ;;  %v293_v16 = vadd.f32 %v250_v12, %v249_v11  ;;  %v244_v19 = vld [vmem:[%s1223_s23 + $0x98] sm:$0xff]  ;;  %v241_v20 = vld [vmem:[%s1223_s23 + $0x80] sm:$0xff] }
  0x13   : > { %291 = vadd.xlane.f32.xlu2 %v290_v8  ;;  %v287_v17 = vadd.f32 %v246_v14, %v245_v13  ;;  %v242_v21 = vld [vmem:[%s1223_s23 + $0x88] sm:$0xff]  ;;  %v239_v22 = vld [vmem:[%s1223_s23 + $0x70] sm:$0xff]  ;;  %v240_v23 = vld [vmem:[%s1223_s23 + $0x78] sm:$0xff]  ;;  %v284_v24 = vadd.f32 %v244_v19, %v243_v18 }
  0x14   : > { %v281_v25 = vadd.f32 %v242_v21, %v241_v20  ;;  %v278_v26 = vadd.f32 %v240_v23, %v239_v22  ;;  %v237_v27 = vld [vmem:[%s1223_s23 + $0x60] sm:$0xff]  ;;  %v238_v28 = vld [vmem:[%s1223_s23 + $0x68] sm:$0xff]  ;;  %v235_v29 = vld [vmem:[%s1223_s23 + $0x50] sm:$0xff] }
  0x15   : > { %v236_v30 = vld [vmem:[%s1223_s23 + $0x58] sm:$0xff]  ;;  %v233_v31 = vld [vmem:[%s1223_s23 + $0x40] sm:$0xff]  ;;  %v234_v32 = vld [vmem:[%s1223_s23 + $0x48] sm:$0xff]  ;;  %v275_v33 = vadd.f32 %v238_v28, %v237_v27 }
  0x16   : > { %v272_v34 = vadd.f32 %v236_v30, %v235_v29  ;;  %v269_v35 = vadd.f32 %v234_v32, %v233_v31  ;;  %v231_v36 = vld [vmem:[%s1223_s23 + $0x30] sm:$0xff]  ;;  %v232_v37 = vld [vmem:[%s1223_s23 + $0x38] sm:$0xff]  ;;  %v229_v38 = vld [vmem:[%s1223_s23 + $0x20] sm:$0xff] }
  0x17   : > { %v230_v39 = vld [vmem:[%s1223_s23 + $0x28] sm:$0xff]  ;;  %v1254_v40 = vld [vmem:[%s1223_s23 + $0x10] sm:$0xff]  ;;  %v1257_v41 = vld [vmem:[%s1223_s23 + $0x18] sm:$0xff]  ;;  %v266_v42 = vadd.f32 %v232_v37, %v231_v36 }
  0x18   : > { %v263_v43 = vadd.f32 %v230_v39, %v229_v38  ;;  %v260_v44 = vadd.f32 %v1257_v41, %v1254_v40  ;;  %v1262_v45 = vld [vmem:[%s1223_s23] sm:$0xff]  ;;  %v1265_v46 = vld [vmem:[%s1223_s23 + $0x8] sm:$0xff]  ;;  %v323_v18 = vld [vmem:[%s1785_s1 + $0x10] sm:$0xff] }
  0x19   : > { %300 = vadd.xlane.f32.xlu0 %v299_v15  ;;  %v257_v47 = vadd.f32 %v1265_v46, %v1262_v45  ;;  %v324_v19 = vld [vmem:[%s1785_s1 + $0x18] sm:$0xff]  ;;  %v327_v23 = vld [vmem:[%s1786_s2 + $0x10] sm:$0xff]  ;;  %v325_v29 = vld [vmem:[%s1786_s2] sm:$0xff] }
  0x1a   : > { %294 = vadd.xlane.f32.xlu1 %v293_v16  ;;  %v321_v16 = vld [vmem:[%s1785_s1] sm:$0xff]  ;;  %v368_v37 = vld [vmem:[%s1787_s3 + $0x30] sm:$0xff]  ;;  %v363_v39 = vld [vmem:[%s1787_s3 + $0x8] sm:$0xff] }
  0x1b   : > { %288 = vadd.xlane.f32.xlu2 %v287_v17  ;;  %v322_v17 = vld [vmem:[%s1785_s1 + $0x8] sm:$0xff]  ;;  %v362_v36 = vld [vmem:[%s1787_s3] sm:$0xff] }
  0x1c   : > { %v374_v38 = vld [vmem:[%s1787_s3 + $0x60] sm:$0xff] }
  0x21   : > { %285 = vadd.xlane.f32.xlu0 %v284_v24  ;;  %v328_v24 = vld [vmem:[%s1786_s2 + $0x18] sm:$0xff] }
  0x22   : > { %282 = vadd.xlane.f32.xlu1 %v281_v25  ;;  %v326_v25 = vld [vmem:[%s1786_s2 + $0x8] sm:$0xff] }
  0x23   : > { %279 = vadd.xlane.f32.xlu2 %v278_v26 }
  0x29   : > { %276 = vadd.xlane.f32.xlu0 %v275_v33 }
  0x2a   : > { %273 = vadd.xlane.f32.xlu1 %v272_v34 }
  0x2b   : > { %270 = vadd.xlane.f32.xlu2 %v269_v35 }
  0x31   : > { %267 = vadd.xlane.f32.xlu0 %v266_v42  ;;  %v369_v42 = vld [vmem:[%s1787_s3 + $0x38] sm:$0xff] }
  0x32   : > { %264 = vadd.xlane.f32.xlu1 %v263_v43  ;;  %v375_v43 = vld [vmem:[%s1787_s3 + $0x68] sm:$0xff] }
  0x33   : > { %261 = vadd.xlane.f32.xlu2 %v260_v44  ;;  %v364_v44 = vld [vmem:[%s1787_s3 + $0x10] sm:$0xff] }
  0x39   : > { %258 = vadd.xlane.f32.xlu0 %v257_v47  ;;  %v370_v47 = vld [vmem:[%s1787_s3 + $0x40] sm:$0xff] }
  0x84   : > { %v304_v48 = vpop.xlane.xlu0 %303 }
  0x85   : > { %v320_v49 = vmul.f32 0.00390625, %v304_v48  ;;  %v298_v50 = vpop.xlane.xlu1 %297  ;;  %v376_v48 = vld [vmem:[%s1787_s3 + $0x70] sm:$0xff] }
  0x86   : > { %v292_v51 = vpop.xlane.xlu2 %291  ;;  %v318_v56 = vmul.f32 0.00390625, %v298_v50  ;;  %v371_v50 = vld [vmem:[%s1787_s3 + $0x48] sm:$0xff] }
  0x87   : > { %329 = vmatpush.msra.mxu0 %v320_v49  ;;  %v316_v58 = vmul.f32 0.00390625, %v292_v51  ;;  %v365_v49 = vld [vmem:[%s1787_s3 + $0x18] sm:$0xff] }
  0x88   : > { %v377_v51 = vld [vmem:[%s1787_s3 + $0x78] sm:$0xff] }
  0x8c   : > { %v301_v52 = vpop.xlane.xlu0 %300 }
  0x8d   : > { %v319_v53 = vmul.f32 0.00390625, %v301_v52  ;;  %v295_v54 = vpop.xlane.xlu1 %294  ;;  %v366_v52 = vld [vmem:[%s1787_s3 + $0x20] sm:$0xff] }
  0x8e   : > { %v289_v55 = vpop.xlane.xlu2 %288  ;;  %v317_v57 = vmul.f32 0.00390625, %v295_v54  ;;  %v367_v54 = vld [vmem:[%s1787_s3 + $0x28] sm:$0xff] }
  0x8f   : > { %330 = vmatpush.msra.mxu0 %v319_v53  ;;  %v315_v60 = vmul.f32 0.00390625, %v289_v55  ;;  %v372_v53 = vld [vmem:[%s1787_s3 + $0x50] sm:$0xff]  ;;  %v373_v55 = vld [vmem:[%s1787_s3 + $0x58] sm:$0xff] }
  0x91   : > { %331 = vmatpush.msra.mxu0 %v318_v56  ;;  %v378_v56 = vld [vmem:[%s1788_s4] sm:$0xff] }
  0x93   : > { %332 = vmatpush.msra.mxu0 %v317_v57 }
  0x94   : > { %v286_v59 = vpop.xlane.xlu0 %285 }
  0x95   : > { %333 = vmatpush.msra.mxu0 %v316_v58  ;;  %v283_v61 = vpop.xlane.xlu1 %282  ;;  %v314_v63 = vmul.f32 0.00390625, %v286_v59  ;;  %v1176_v58 = vmov 0  }
  0x96   : > { %v280_v62 = vpop.xlane.xlu2 %279  ;;  %v313_v0 = vmul.f32 0.00390625, %v283_v61  ;;  %1073 = vset.pattern.permute.xlu1 %v1176_v58  ;;  %1075 = vset.pattern.permute.xlu2 %v1176_v58  ;;  %v384_v61 = vld [vmem:[%s1788_s4 + $0x30] sm:$0xff] }
  0x97   : > { %334 = vmatpush.msra.mxu0 %v315_v60  ;;  %v312_v1 = vmul.f32 0.00390625, %v280_v62  ;;  %1074 = vset.pattern.permute.xlu0 %v1176_v58  ;;  %v390_v62 = vld [vmem:[%s1788_s4 + $0x60] sm:$0xff] }
  0x99   : > { %335 = vmatpush.msra.mxu0 %v314_v63  ;;  %v379_v63 = vld [vmem:[%s1788_s4 + $0x8] sm:$0xff] }
  0x9b   : > { %336 = vmatpush.msra.mxu0 %v313_v0 }
  0x9c   : > { %v277_v2 = vpop.xlane.xlu0 %276 }
  0x9d   : > { %v311_v3 = vmul.f32 0.00390625, %v277_v2  ;;  %337 = vmatpush.msra.mxu0 %v312_v1  ;;  %v274_v4 = vpop.xlane.xlu1 %273 }
  0x9e   : > { %v271_v5 = vpop.xlane.xlu2 %270  ;;  %v310_v6 = vmul.f32 0.00390625, %v274_v4 }
  0x9f   : > { %338 = vmatpush.msra.mxu0 %v311_v3  ;;  %v309_v7 = vmul.f32 0.00390625, %v271_v5 }
  0xa1   : > { %339 = vmatpush.msra.mxu0 %v310_v6 }
  0xa3   : > { %340 = vmatpush.msra.mxu0 %v309_v7 }
  0xa4   : > { %v268_v8 = vpop.xlane.xlu0 %267 }
  0xa5   : > { %v308_v9 = vmul.f32 0.00390625, %v268_v8  ;;  %v265_v10 = vpop.xlane.xlu1 %264 }
  0xa6   : > { %v262_v11 = vpop.xlane.xlu2 %261  ;;  %v307_v12 = vmul.f32 0.00390625, %v265_v10 }
  0xa7   : > { %341 = vmatpush.msra.mxu0 %v308_v9  ;;  %v306_v13 = vmul.f32 0.00390625, %v262_v11  ;;  %v385_v11 = vld [vmem:[%s1788_s4 + $0x38] sm:$0xff] }
  0xa9   : > { %342 = vmatpush.msra.mxu0 %v307_v12  ;;  %v380_v12 = vld [vmem:[%s1788_s4 + $0x10] sm:$0xff] }
  0xab   : > { %343 = vmatpush.msra.mxu0 %v306_v13  ;;  %v391_v13 = vld [vmem:[%s1788_s4 + $0x68] sm:$0xff] }
  0xac   : > { %v259_v14 = vpop.xlane.xlu0 %258 }
  0xad   : > { %v305_v15 = vmul.f32 0.00390625, %v259_v14 }
  0xaf   : > { %344 = vmatpush.msra.mxu0 %v305_v15 }
  0xb0   : > { %345 = vmatmul.f32.vlgmr.msra.gmra.mxu0 %v321_v16 }
  0xb8   : > { %348 = vmatmul.f32.gmra.mxu0 %v322_v17 }
  0xc0   : > { %351 = vmatmul.f32.gmra.mxu0 %v323_v18 }
  0xc8   : > { %354 = vmatmul.f32.gmra.mxu0 %v324_v19 }
 0x12d   : > { %v346_v20 = vpop.f32.mrf.mxu0 }
 0x12e   : > { %v347_v32 = vadd.f32 %v346_v20, %v325_v29 }
 0x130   : > { %v358_v35 = vmax.f32 %v347_v32, 0.0  ;;  %v392_v32 = vld [vmem:[%s1788_s4 + $0x70] sm:$0xff] }
 0x135   : > { %v349_v21 = vpop.f32.mrf.mxu0 }
 0x136   : > { %v350_v30 = vadd.f32 %v349_v21, %v326_v25 }
 0x138   : > { %v359_v34 = vmax.f32 %v350_v30, 0.0  ;;  %v386_v30 = vld [vmem:[%s1788_s4 + $0x40] sm:$0xff] }
 0x13d   : > { %v352_v22 = vpop.f32.mrf.mxu0 }
 0x13e   : > { %v353_v27 = vadd.f32 %v352_v22, %v327_v23 }
 0x140   : > { %v360_v33 = vmax.f32 %v353_v27, 0.0 }
 0x145   : > { %v355_v26 = vpop.f32.mrf.mxu0 }
 0x146   : > { %v356_v28 = vadd.f32 %v355_v26, %v328_v24 }
 0x148   : > { %v361_v31 = vmax.f32 %v356_v28, 0.0 }
 0x14a   : > { %455 = vmatpush.msra.mxu1 %v361_v31  ;;  %1056 = vmatpush.msra.mxu2 %v361_v31 }
 0x14b   : > { %1057 = vmatpush.msra.mxu3 %v361_v31 }
 0x14c   : > { %456 = vmatpush.msra.mxu1 %v360_v33  ;;  %1058 = vmatpush.msra.mxu2 %v360_v33 }
 0x14d   : > { %1059 = vmatpush.msra.mxu3 %v360_v33 }
 0x14e   : > { %457 = vmatpush.msra.mxu1 %v359_v34  ;;  %1060 = vmatpush.msra.mxu2 %v359_v34 }
 0x14f   : > { %1061 = vmatpush.msra.mxu3 %v359_v34 }
 0x150   : > { %458 = vmatpush.msra.mxu1 %v358_v35  ;;  %1062 = vmatpush.msra.mxu2 %v358_v35 }
 0x151   : > { %1063 = vmatpush.msra.mxu3 %v358_v35  ;;  %1020 = vmatmul.msk.f32.vlgmr.msra.gmra.mxu1 %vm394_vm0, %v362_v36  ;;  %v381_v35 = vld [vmem:[%s1788_s4 + $0x18] sm:$0xff] }
 0x152   : > { %1026 = vmatmul.msk.f32.vlgmr.msra.gmra.mxu2 %vm394_vm0, %v368_v37  ;;  %1032 = vmatmul.msk.f32.vlgmr.msra.gmra.mxu3 %vm394_vm0, %v374_v38 }
 0x159   : > { %1021 = vmatmul.msk.f32.gmra.mxu1 %vm394_vm0, %v363_v39 }
 0x15a   : > { %1027 = vmatmul.msk.f32.gmra.mxu2 %vm394_vm0, %v369_v42  ;;  %1033 = vmatmul.msk.f32.gmra.mxu3 %vm394_vm0, %v375_v43 }
 0x161   : > { %1022 = vmatmul.msk.f32.gmra.mxu1 %vm394_vm0, %v364_v44 }
 0x162   : > { %1028 = vmatmul.msk.f32.gmra.mxu2 %vm394_vm0, %v370_v47  ;;  %1034 = vmatmul.msk.f32.gmra.mxu3 %vm394_vm0, %v376_v48 }
 0x169   : > { %1023 = vmatmul.msk.f32.gmra.mxu1 %vm394_vm0, %v365_v49 }
 0x16a   : > { %1029 = vmatmul.msk.f32.gmra.mxu2 %vm394_vm0, %v371_v50  ;;  %1035 = vmatmul.msk.f32.gmra.mxu3 %vm394_vm0, %v377_v51 }
 0x171   : > { %1024 = vmatmul.msk.f32.gmra.mxu1 %vm394_vm0, %v366_v52 }
 0x172   : > { %1030 = vmatmul.msk.f32.gmra.mxu2 %vm394_vm0, %v372_v53 }
 0x179   : > { %1025 = vmatmul.msk.f32.gmra.mxu1 %vm394_vm0, %v367_v54 }
 0x17a   : > { %1031 = vmatmul.msk.f32.gmra.mxu2 %vm394_vm0, %v373_v55 }
 0x1ce   : > { %v460_v57 = vpop.f32.mrf.mxu1 }
 0x1cf   : > { %v461_v59 = vadd.f32 %v460_v57, %v378_v56 }
 0x1d1   : > { %v1036_v60 = vmul.f32 -1.442695, %v461_v59 }
 0x1d3   : > { %1076 = vpow2.f32 %v1036_v60 }
 0x1d5   : > { %v478_v0 = vpop.f32.mrf.mxu2  ;;  %v496_v1 = vpop.f32.mrf.mxu3 }
 0x1d6   : > { %v479_v2 = vadd.f32 %v478_v0, %v384_v61  ;;  %v463_v3 = vpop.f32.mrf.mxu1  ;;  %v497_v4 = vadd.f32 %v496_v1, %v390_v62 }
 0x1d7   : > { %v464_v5 = vadd.f32 %v463_v3, %v379_v63  ;;  %v387_v3 = vld [vmem:[%s1788_s4 + $0x48] sm:$0xff] }
 0x1d8   : > { %v1042_v6 = vmul.f32 -1.442695, %v479_v2  ;;  %v1048_v9 = vmul.f32 -1.442695, %v497_v4 }
 0x1d9   : > { %v1077_v7 = vpop.eup %1076  ;;  %v1037_v8 = vmul.f32 -1.442695, %v464_v5  ;;  %v393_v5 = vld [vmem:[%s1788_s4 + $0x78] sm:$0xff] }
 0x1da   : > { %v1369_v10 = vadd.f32 1.0, %v1077_v7  ;;  %1078 = vpow2.f32 %v1042_v6 }
 0x1db   : > { %1080 = vpow2.f32 %v1037_v8 }
 0x1dc   : > { %1082 = vrcp.f32 %v1369_v10  ;;  %v581_v22 = vand.u32 2147483647, %v1369_v10  ;;  %v583_v26 = vand.u32 2147483648, %v1369_v10  ;;  %vm577_vm1 = vweird.f32 %v1369_v10 }
 0x1dd   : > { %1084 = vpow2.f32 %v1048_v9  ;;  %v481_v14 = vpop.f32.mrf.mxu2  ;;  %v499_v15 = vpop.f32.mrf.mxu3 }
 0x1de   : > { %v482_v16 = vadd.f32 %v481_v14, %v385_v11  ;;  %v466_v17 = vpop.f32.mrf.mxu1  ;;  %v500_v19 = vadd.f32 %v499_v15, %v391_v13  ;;  %vm1402_vm2 = vcmp.eq.f32.partialorder %v581_v22, 8.507059e+37  ;;  %v584_v42 = vor.u32 1.1754944e-38, %v583_v26 }
 0x1df   : > { %v467_v18 = vadd.f32 %v466_v17, %v380_v12  ;;  %v382_v12 = vld [vmem:[%s1788_s4 + $0x20] sm:$0xff] }
 0x1e0   : > { %v1079_v20 = vpop.eup %1078  ;;  %v1043_v21 = vmul.f32 -1.442695, %v482_v16  ;;  %v1049_v31 = vmul.f32 -1.442695, %v500_v19 }
 0x1e1   : > { %v1081_v23 = vpop.eup %1080  ;;  %v1382_v24 = vadd.f32 1.0, %v1079_v20  ;;  %v1038_v25 = vmul.f32 -1.442695, %v467_v18 }
 0x1e2   : > { %v1083_v27 = vpop.eup %1082  ;;  %v1385_v28 = vadd.f32 1.0, %v1081_v23  ;;  %1086 = vpow2.f32 %v1043_v21 }
 0x1e3   : > { %v1085_v29 = vpop.eup %1084  ;;  %1088 = vrcp.f32 %v1382_v24  ;;  %v573_v33 = vmul.f32 %v1083_v27, %v1369_v10  ;;  %vm578_vm3 = vweird.f32 %v1083_v27  ;;  %v671_v56 = vand.u32 2147483647, %v1382_v24 }
 0x1e4   : > { %1090 = vrcp.f32 %v1385_v28  ;;  %v1396_v34 = vadd.f32 1.0, %v1085_v29  ;;  %vm592_vm4 = vweird.f32 %v1385_v28  ;;  %v596_v48 = vand.u32 2147483647, %v1385_v28  ;;  %vm1422_vm5 = vmor %vm577_vm1, %vm578_vm3 }
 0x1e5   : > { %1092 = vpow2.f32 %v1038_v25  ;;  %v484_v37 = vpop.f32.mrf.mxu2  ;;  %v502_v38 = vpop.f32.mrf.mxu3  ;;  %v574_v39 = vsub.f32 1.0, %v573_v33  ;;  %v598_v55 = vand.u32 2147483648, %v1385_v28  ;;  %vm667_vm7 = vweird.f32 %v1382_v24 }
 0x1e6   : > { %1094 = vrcp.f32 %v1396_v34  ;;  %v485_v43 = vadd.f32 %v484_v37, %v386_v30  ;;  %v469_v44 = vpop.f32.mrf.mxu1  ;;  %v503_v47 = vadd.f32 %v502_v38, %v392_v32  ;;  %v761_v51 = vand.u32 2147483647, %v1396_v34 }
 0x1e7   : > { %1096 = vpow2.f32 %v1049_v31  ;;  %v470_v49 = vadd.f32 %v469_v44, %v381_v35  ;;  %v575_v50 = vmul.f32 %v1083_v27, %v574_v39  ;;  %v763_v54 = vand.u32 2147483648, %v1396_v34 }
 0x1e8   : > { %v1087_v52 = vpop.eup %1086  ;;  %v1044_v53 = vmul.f32 -1.442695, %v485_v43  ;;  %v1050_v60 = vmul.f32 -1.442695, %v503_v47  ;;  %vm757_vm6 = vweird.f32 %v1396_v34  ;;  %vm1441_vm8 = vcmp.eq.f32.partialorder %v761_v51, 8.507059e+37 }
 0x1e9   : > { %v1413_v57 = vpop.eup %1088  ;;  %v1415_v58 = vadd.f32 1.0, %v1087_v52  ;;  %v1039_v59 = vmul.f32 -1.442695, %v470_v49  ;;  %v576_v61 = vadd.f32 %v1083_v27, %v575_v50  ;;  %v1427_v0 = vor.u32 1.1754944e-38, %v763_v54  ;;  %v388_v49 = vld [vmem:[%s1788_s4 + $0x50] sm:$0xff] }
 0x1ea   : > { %v1417_v62 = vpop.eup %1090  ;;  %1098 = vpow2.f32 %v1044_v53  ;;  %v663_v1 = vmul.f32 %v1413_v57, %v1382_v24  ;;  %vm1448_vm10 = vcmp.eq.f32.partialorder %v596_v48, 8.507059e+37  ;;  %v599_v31 = vor.u32 1.1754944e-38, %v598_v55  ;;  %v383_v55 = vld [vmem:[%s1788_s4 + $0x28] sm:$0xff] }
 0x1eb   : > { %v1093_v2 = vpop.eup %1092  ;;  %1100 = vrcp.f32 %v1415_v58  ;;  %v580_v4 = vsel %vm1422_vm5, %v1083_v27, %v576_v61  ;;  %v588_v7 = vmul.f32 %v1417_v62, %v1385_v28  ;;  %vm593_vm9 = vweird.f32 %v1417_v62 }
 0x1ec   : > { %v1452_v9 = vpop.eup %1094  ;;  %v1454_v10 = vadd.f32 1.0, %v1093_v2  ;;  %1102 = vpow2.f32 %v1039_v59  ;;  %v585_v11 = vsel %vm1402_vm2, %v584_v42, %v580_v4  ;;  %v664_v13 = vsub.f32 1.0, %v663_v1  ;;  %vm1481_vm13 = vmor %vm592_vm4, %vm593_vm9 }
 0x1ed   : > { %v1097_v14 = vpop.eup %1096  ;;  %v487_v15 = vpop.f32.mrf.mxu2  ;;  %1104 = vpow2.f32 %v1050_v60  ;;  %814 = vperm.xlu1 %1073, %v585_v11   ;;  %v753_v17 = vmul.f32 %v1452_v9, %v1396_v34  ;;  %vm758_vm11 = vweird.f32 %v1452_v9  ;;  %v589_v18 = vsub.f32 1.0, %v588_v7 }
 0x1ee   : > { %v505_v16 = vpop.f32.mrf.mxu3  ;;  %1106 = vrcp.f32 %v1454_v10  ;;  %v1465_v19 = vadd.f32 1.0, %v1097_v14  ;;  %v488_v20 = vadd.f32 %v487_v15, %v387_v3  ;;  %v472_v21 = vpop.f32.mrf.mxu1  ;;  %v665_v27 = vmul.f32 %v1413_v57, %v664_v13  ;;  %vm1489_vm14 = vmor %vm757_vm6, %vm758_vm11 }
 0x1ef   : > { %v506_v22 = vadd.f32 %v505_v16, %v393_v5  ;;  %v473_v23 = vadd.f32 %v472_v21, %v382_v12  ;;  %v754_v25 = vsub.f32 1.0, %v753_v17  ;;  %v590_v26 = vmul.f32 %v1417_v62, %v589_v18  ;;  %v389_v17 = vld [vmem:[%s1788_s4 + $0x58] sm:$0xff] }
 0x1f0   : > { %v1099_v29 = vpop.eup %1098  ;;  %1108 = vrcp.f32 %v1465_v19  ;;  %v1045_v30 = vmul.f32 -1.442695, %v488_v20  ;;  %vm668_vm12 = vweird.f32 %v1413_v57  ;;  %v666_v44 = vadd.f32 %v1413_v57, %v665_v27 }
 0x1f1   : > { %v1471_v32 = vpop.eup %1100  ;;  %v1473_v33 = vadd.f32 1.0, %v1099_v29  ;;  %v1040_v35 = vmul.f32 -1.442695, %v473_v23  ;;  %v755_v36 = vmul.f32 %v1452_v9, %v754_v25  ;;  %v591_v37 = vadd.f32 %v1417_v62, %v590_v26  ;;  %vm1509_vm15 = vmor %vm667_vm7, %vm668_vm12 }
 0x1f2   : > { %v1103_v39 = vpop.eup %1102  ;;  %1110 = vpow2.f32 %v1045_v30  ;;  %v1051_v42 = vmul.f32 -1.442695, %v506_v22  ;;  %v673_v47 = vand.u32 2147483648, %v1382_v24  ;;  %v670_v54 = vsel %vm1509_vm15, %v1413_v57, %v666_v44 }
 0x1f3   : > { %v1105_v28 = vpop.eup %1104  ;;  %1112 = vrcp.f32 %v1473_v33  ;;  %v1496_v48 = vadd.f32 1.0, %v1103_v39  ;;  %v756_v50 = vadd.f32 %v1452_v9, %v755_v36  ;;  %v595_v34 = vsel %vm1481_vm13, %v1417_v62, %v591_v37 }
 0x1f4   : > { %v1107_v52 = vpop.eup %1106  ;;  %1114 = vpow2.f32 %v1040_v35  ;;  %v600_v53 = vsel %vm1448_vm10, %v599_v31, %v595_v34  ;;  %vm672_vm0 = vcmp.eq.f32.partialorder %v671_v56, 8.507059e+37  ;;  %v674_v61 = vor.u32 1.1754944e-38, %v673_v47 }
 0x1f5   : > { %v490_v59 = vpop.f32.mrf.mxu2  ;;  %v760_v60 = vsel %vm1489_vm14, %v1452_v9, %v756_v50  ;;  %819 = vperm.xlu2 %1075, %v600_v53   ;;  %v603_v62 = vmul.f32 %v1107_v52, %v1454_v10  ;;  %1116 = vrcp.f32 %v1496_v48  ;;  %vm607_vm1 = vweird.f32 %v1454_v10 }
 0x1f6   : > { %v1527_v63 = vpop.eup %1108  ;;  %v491_v57 = vadd.f32 %v490_v59, %v388_v49  ;;  %v765_v1 = vsel %vm1441_vm8, %v1427_v0, %v760_v60  ;;  %v475_v2 = vpop.f32.mrf.mxu1  ;;  %1118 = vpow2.f32 %v1051_v42  ;;  %v675_v3 = vsel %vm672_vm0, %v674_v61, %v670_v54 }
 0x1f7   : > { %874 = vperm.xlu0 %1074, %v765_v1   ;;  %v476_v24 = vadd.f32 %v475_v2, %v383_v55  ;;  %v604_v56 = vsub.f32 1.0, %v603_v62  ;;  %844 = vperm.xlu1 %1073, %v675_v3   ;;  %vm608_vm2 = vweird.f32 %v1107_v52  ;;  %v611_v7 = vand.u32 2147483647, %v1454_v10 }
 0x1f8   : > { %v1111_v4 = vpop.eup %1110  ;;  %v1046_v5 = vmul.f32 -1.442695, %v491_v57  ;;  %v613_v8 = vand.u32 2147483648, %v1454_v10  ;;  %v678_v12 = vmul.f32 %v1471_v32, %v1415_v58  ;;  %v1542_v14 = vadd.f32 1.0, %v1105_v28  ;;  %vm609_vm4 = vmor %vm607_vm1, %vm608_vm2 }
 0x1f9   : > { %v1536_v9 = vpop.eup %1112  ;;  %v1538_v6 = vadd.f32 1.0, %v1111_v4  ;;  %v1041_v0 = vmul.f32 -1.442695, %v476_v24  ;;  %v605_v11 = vmul.f32 %v1107_v52, %v604_v56  ;;  %vm1544_vm3 = vcmp.eq.f32.partialorder %v611_v7, 8.507059e+37 }
 0x1fa   : > { %v1115_v13 = vpop.eup %1114  ;;  %1120 = vpow2.f32 %v1046_v5  ;;  %v679_v20 = vsub.f32 1.0, %v678_v12  ;;  %v614_v22 = vor.u32 1.1754944e-38, %v613_v8  ;;  %v686_v23 = vand.u32 2147483647, %v1415_v58 }
 0x1fb   : > { %1122 = vrcp.f32 %v1538_v6  ;;  %v1549_v16 = vadd.f32 1.0, %v1115_v13  ;;  %v606_v18 = vadd.f32 %v1107_v52, %v605_v11  ;;  %v1554_v21 = vpop.eup %1116  ;;  %v688_v25 = vand.u32 2147483648, %v1415_v58 }
 0x1fc   : > { %1124 = vpow2.f32 %v1041_v0  ;;  %v1119_v26 = vpop.eup %1118  ;;  %v680_v30 = vmul.f32 %v1471_v32, %v679_v20  ;;  %vm683_vm5 = vweird.f32 %v1471_v32  ;;  %v693_v31 = vmul.f32 %v1536_v9, %v1473_v33 }
 0x1fd   : > { %v493_v27 = vpop.f32.mrf.mxu2  ;;  %v610_v29 = vsel %vm609_vm4, %v1107_v52, %v606_v18  ;;  %1126 = vrcp.f32 %v1549_v16  ;;  %vm682_vm6 = vweird.f32 %v1415_v58  ;;  %v1569_v36 = vadd.f32 1.0, %v1119_v26 }
 0x1fe   : > { %v494_v35 = vadd.f32 %v493_v27, %v389_v17  ;;  %v615_v10 = vsel %vm1544_vm3, %v614_v22, %v610_v29  ;;  %v681_v37 = vadd.f32 %v1471_v32, %v680_v30  ;;  %vm687_vm7 = vcmp.eq.f32.partialorder %v686_v23, 8.507059e+37  ;;  %vm684_vm8 = vmor %vm682_vm6, %vm683_vm5 }
 0x1ff   : > { %824 = vperm.xlu0 %1074, %v615_v10   ;;  %v694_v38 = vsub.f32 1.0, %v693_v31  ;;  %v689_v43 = vor.u32 1.1754944e-38, %v688_v25  ;;  %vm698_vm9 = vweird.f32 %v1536_v9  ;;  %v701_v44 = vand.u32 2147483647, %v1473_v33 }
 0x200   : > { %v1121_v39 = vpop.eup %1120  ;;  %v1047_v42 = vmul.f32 -1.442695, %v494_v35  ;;  %v685_v58 = vsel %vm684_vm8, %v1471_v32, %v681_v37  ;;  %v703_v50 = vand.u32 2147483648, %v1473_v33  ;;  %vm697_vm10 = vweird.f32 %v1473_v33 }
 0x201   : > { %v1574_v47 = vpop.eup %1122  ;;  %v1576_v28 = vadd.f32 1.0, %v1121_v39  ;;  %v695_v49 = vmul.f32 %v1536_v9, %v694_v38  ;;  %v690_v51 = vsel %vm687_vm7, %v689_v43, %v685_v58  ;;  %v618_v52 = vmul.f32 %v1554_v21, %v1496_v48  ;;  %vm699_vm12 = vmor %vm697_vm10, %vm698_vm9 }
 0x202   : > { %v1125_v34 = vpop.eup %1124  ;;  %1128 = vpow2.f32 %v1047_v42  ;;  %849 = vperm.xlu2 %1075, %v690_v51   ;;  %vm702_vm11 = vcmp.eq.f32.partialorder %v701_v44, 8.507059e+37  ;;  %v704_v55 = vor.u32 1.1754944e-38, %v703_v50  ;;  %v626_v59 = vand.u32 2147483647, %v1496_v48 }
 0x203   : > { %1130 = vrcp.f32 %v1569_v36  ;;  %v1585_v53 = vadd.f32 1.0, %v1125_v34  ;;  %v696_v54 = vadd.f32 %v1536_v9, %v695_v49  ;;  %v1588_v32 = vpop.eup %1126  ;;  %v619_v33 = vsub.f32 1.0, %v618_v52 }
 0x204   : > { %1132 = vrcp.f32 %v1576_v28  ;;  %vm622_vm13 = vweird.f32 %v1496_v48  ;;  %v628_v61 = vand.u32 2147483648, %v1496_v48  ;;  %v708_v62 = vmul.f32 %v1574_v47, %v1538_v6 }
 0x205   : > { %v700_v60 = vsel %vm699_vm12, %v1536_v9, %v696_v54  ;;  %1134 = vrcp.f32 %v1585_v53  ;;  %v620_v1 = vmul.f32 %v1554_v21, %v619_v33  ;;  %vm623_vm14 = vweird.f32 %v1554_v21  ;;  %v1146_v54 = vld [vmem:[%s1223_s23 + $0x60] sm:$0xff] }
 0x206   : > { %v705_v57 = vsel %vm702_vm11, %v704_v55, %v700_v60  ;;  %vm1602_vm15 = vcmp.eq.f32.partialorder %v626_v59, 8.507059e+37  ;;  %v709_v3 = vsub.f32 1.0, %v708_v62  ;;  %vm712_vm0 = vweird.f32 %v1538_v6  ;;  %vm624_vm1 = vmor %vm622_vm13, %vm623_vm14 }
 0x207   : > { %854 = vperm.xlu1 %1073, %v705_v57   ;;  %v716_v24 = vand.u32 2147483647, %v1538_v6  ;;  %v621_v4 = vadd.f32 %v1554_v21, %v620_v1  ;;  %v629_v5 = vor.u32 1.1754944e-38, %v628_v61  ;;  %v718_v7 = vand.u32 2147483648, %v1538_v6 }
 0x208   : > { %v1129_v56 = vpop.eup %1128  ;;  %v633_v8 = vmul.f32 %v1588_v32, %v1549_v16  ;;  %v710_v11 = vmul.f32 %v1574_v47, %v709_v3  ;;  %vm713_vm2 = vweird.f32 %v1574_v47  ;;  %vm637_vm3 = vweird.f32 %v1549_v16 }
 0x209   : > { %v1131_v9 = vpop.eup %1130  ;;  %v1612_v0 = vadd.f32 1.0, %v1129_v56  ;;  %v625_v13 = vsel %vm624_vm1, %v1554_v21, %v621_v4  ;;  %vm1622_vm4 = vcmp.eq.f32.partialorder %v716_v24, 8.507059e+37  ;;  %vm638_vm5 = vweird.f32 %v1588_v32  ;;  %vm714_vm6 = vmor %vm712_vm0, %vm713_vm2  ;;  %v1152_v4 = vld [vmem:[%s1223_s23 + $0x80] sm:$0xff] }
 0x20a   : > { %v1619_v12 = vpop.eup %1132  ;;  %v634_v17 = vsub.f32 1.0, %v633_v8  ;;  %v630_v48 = vsel %vm1602_vm15, %v629_v5, %v625_v13  ;;  %v711_v18 = vadd.f32 %v1574_v47, %v710_v11  ;;  %v643_v20 = vand.u32 2147483648, %v1549_v16  ;;  %vm639_vm9 = vmor %vm637_vm3, %vm638_vm5 }
 0x20b   : > { %1136 = vrcp.f32 %v1612_v0  ;;  %v1632_v22 = vpop.eup %1134  ;;  %829 = vperm.xlu2 %1075, %v630_v48   ;;  %v719_v21 = vor.u32 1.1754944e-38, %v718_v7  ;;  %v641_v25 = vand.u32 2147483647, %v1549_v16  ;;  %v798_v26 = vmul.f32 %v1131_v9, %v1569_v36 }
 0x20c   : > { %v635_v23 = vmul.f32 %v1588_v32, %v634_v17  ;;  %v715_v27 = vsel %vm714_vm6, %v1574_v47, %v711_v18  ;;  %vm802_vm7 = vweird.f32 %v1569_v36  ;;  %vm803_vm8 = vweird.f32 %v1131_v9 }
 0x20d   : > { %v806_v29 = vand.u32 2147483647, %v1569_v36  ;;  %v720_v30 = vsel %vm1622_vm4, %v719_v21, %v715_v27  ;;  %v799_v31 = vsub.f32 1.0, %v798_v26  ;;  %v808_v35 = vand.u32 2147483648, %v1569_v36  ;;  %vm1657_vm11 = vmor %vm802_vm7, %vm803_vm8 }
 0x20e   : > { %v636_v6 = vadd.f32 %v1588_v32, %v635_v23  ;;  %859 = vperm.xlu0 %1074, %v720_v30   ;;  %v644_v10 = vor.u32 1.1754944e-38, %v643_v20  ;;  %v723_v37 = vmul.f32 %v1619_v12, %v1576_v28  ;;  %vm642_vm10 = vcmp.eq.f32.partialorder %v641_v25, 8.507059e+37 }
 0x20f   : > { %v800_v39 = vmul.f32 %v1131_v9, %v799_v31  ;;  %v731_v42 = vand.u32 2147483647, %v1576_v28  ;;  %v809_v16 = vor.u32 1.1754944e-38, %v808_v35  ;;  %v648_v49 = vmul.f32 %v1632_v22, %v1585_v53 }
 0x210   : > { %v640_v38 = vsel %vm639_vm9, %v1588_v32, %v636_v6  ;;  %v724_v58 = vsub.f32 1.0, %v723_v37  ;;  %1138 = vrcp.f32 %v1542_v14  ;;  %vm807_vm12 = vcmp.eq.f32.partialorder %v806_v29, 8.507059e+37 }
 0x211   : > { %v1137_v43 = vpop.eup %1136  ;;  %v645_v44 = vsel %vm642_vm10, %v644_v10, %v640_v38  ;;  %v801_v50 = vadd.f32 %v1131_v9, %v800_v39  ;;  %v733_v34 = vand.u32 2147483648, %v1576_v28  ;;  %vm727_vm13 = vweird.f32 %v1576_v28  ;;  %v1140_v38 = vld [vmem:[%s1223_s23 + $0x70] sm:$0xff] }
 0x212   : > { %834 = vperm.xlu1 %1073, %v645_v44   ;;  %v725_v51 = vmul.f32 %v1619_v12, %v724_v58  ;;  %vm728_vm14 = vweird.f32 %v1619_v12  ;;  %v649_v36 = vsub.f32 1.0, %v648_v49  ;;  %vm1670_vm15 = vcmp.eq.f32.partialorder %v731_v42, 8.507059e+37  ;;  %v1141_v42 = vld [vmem:[%s1223_s23 + $0x78] sm:$0xff] }
 0x213   : > { %v805_v52 = vsel %vm1657_vm11, %v1131_v9, %v801_v50  ;;  %vm652_vm0 = vweird.f32 %v1585_v53  ;;  %v738_v32 = vmul.f32 %v1137_v43, %v1612_v0  ;;  %vm653_vm1 = vweird.f32 %v1632_v22  ;;  %vm729_vm2 = vmor %vm727_vm13, %vm728_vm14  ;;  %v1143_v49 = vld [vmem:[%s1223_s23 + $0x38] sm:$0xff] }
 0x214   : > { %v810_v55 = vsel %vm807_vm12, %v809_v16, %v805_v52  ;;  %v726_v33 = vadd.f32 %v1619_v12, %v725_v51  ;;  %v650_v59 = vmul.f32 %v1632_v22, %v649_v36  ;;  %v734_v28 = vor.u32 1.1754944e-38, %v733_v34  ;;  %vm1690_vm3 = vmor %vm652_vm0, %vm653_vm1  ;;  %v1142_v16 = vld [vmem:[%s1223_s23 + $0x30] sm:$0xff]  ;;  %v1145_v51 = vld [vmem:[%s1223_s23 + $0xc8] sm:$0xff] }
 0x215   : > { %v656_v60 = vand.u32 2147483647, %v1585_v53  ;;  %v658_v61 = vand.u32 2147483648, %v1585_v53  ;;  %v739_v62 = vsub.f32 1.0, %v738_v32  ;;  %v748_v2 = vand.u32 2147483648, %v1612_v0 }
 0x216   : > { %889 = vperm.xlu0 %1074, %v810_v55   ;;  %v730_v57 = vsel %vm729_vm2, %v1619_v12, %v726_v33  ;;  %v651_v1 = vadd.f32 %v1632_v22, %v650_v59  ;;  %v768_v3 = vmul.f32 %v1527_v63, %v1465_v19  ;;  %v1139_v24 = vpop.eup %1138  ;;  %vm743_vm4 = vweird.f32 %v1137_v43  ;;  %v1147_v55 = vld [vmem:[%s1223_s23 + $0x68] sm:$0xff] }
 0x217   : > { %v735_v56 = vsel %vm1670_vm15, %v734_v28, %v730_v57  ;;  %v740_v5 = vmul.f32 %v1137_v43, %v739_v62  ;;  %v746_v7 = vand.u32 2147483647, %v1612_v0  ;;  %v659_v9 = vor.u32 1.1754944e-38, %v658_v61  ;;  %v1148_v28 = vld [vmem:[%s1223_s23 + $0x20] sm:$0xff]  ;;  %v1149_v61 = vld [vmem:[%s1223_s23 + $0x28] sm:$0xff] }
 0x218   : > { %864 = vperm.xlu2 %1075, %v735_v56   ;;  %v769_v8 = vsub.f32 1.0, %v768_v3  ;;  %vm742_vm5 = vweird.f32 %v1612_v0  ;;  %v655_v12 = vsel %vm1690_vm3, %v1632_v22, %v651_v1  ;;  %vm657_vm6 = vcmp.eq.f32.partialorder %v656_v60, 8.507059e+37  ;;  %v1150_v1 = vld [vmem:[%s1223_s23 + $0xa0] sm:$0xff]  ;;  %v1151_v3 = vld [vmem:[%s1223_s23 + $0xa8] sm:$0xff] }
 0x219   : > { %v741_v11 = vadd.f32 %v1137_v43, %v740_v5  ;;  %vm744_vm7 = vmor %vm742_vm5, %vm743_vm4  ;;  %v749_v53 = vor.u32 1.1754944e-38, %v748_v2  ;;  %v783_v13 = vmul.f32 %v1139_v24, %v1542_v14  ;;  %vm747_vm8 = vcmp.eq.f32.partialorder %v746_v7, 8.507059e+37  ;;  %v1153_v7 = vld [vmem:[%s1223_s23 + $0x88] sm:$0xff] }
 0x21a   : > { %v770_v17 = vmul.f32 %v1527_v63, %v769_v8  ;;  %vm787_vm9 = vweird.f32 %v1542_v14  ;;  %vm788_vm10 = vweird.f32 %v1139_v24  ;;  %v793_v0 = vand.u32 2147483648, %v1542_v14 }
 0x21b   : > { %v745_v15 = vsel %vm744_vm7, %v1137_v43, %v741_v11  ;;  %v784_v18 = vsub.f32 1.0, %v783_v13  ;;  %v660_v20 = vsel %vm657_vm6, %v659_v9, %v655_v12  ;;  %v791_v22 = vand.u32 2147483647, %v1542_v14  ;;  %vm789_vm13 = vmor %vm787_vm9, %vm788_vm10  ;;  %v1154_v11 = vld [vmem:[%s1223_s23 + $0x50] sm:$0xff] }
 0x21c   : > { %v750_v48 = vsel %vm747_vm8, %v749_v53, %v745_v15  ;;  %vm772_vm11 = vweird.f32 %v1465_v19  ;;  %vm773_vm12 = vweird.f32 %v1527_v63  ;;  %v778_v23 = vand.u32 2147483648, %v1465_v19  ;;  %v1155_v53 = vld [vmem:[%s1223_s23 + $0x58] sm:$0xff] }
 0x21d   : > { %869 = vperm.xlu1 %1073, %v750_v48   ;;  %v785_v21 = vmul.f32 %v1139_v24, %v784_v18  ;;  %v771_v25 = vadd.f32 %v1527_v63, %v770_v17  ;;  %v776_v26 = vand.u32 2147483647, %v1465_v19  ;;  %v794_v29 = vor.u32 1.1754944e-38, %v793_v0  ;;  %vm774_vm14 = vmor %vm772_vm11, %vm773_vm12  ;;  %v1156_v17 = vld [vmem:[%s1223_s23 + $0x90] sm:$0xff]  ;;  %v1157_v18 = vld [vmem:[%s1223_s23 + $0x98] sm:$0xff] }
 0x21e   : > { %vm792_vm15 = vcmp.eq.f32.partialorder %v791_v22, 8.507059e+37  ;;  %v779_v30 = vor.u32 1.1754944e-38, %v778_v23  ;;  %v1158_v22 = vld [vmem:[%s1223_s23 + $0xd0] sm:$0xff]  ;;  %v1159_v23 = vld [vmem:[%s1223_s23 + $0xd8] sm:$0xff] }
 0x21f   : > { %v786_v27 = vadd.f32 %v1139_v24, %v785_v21  ;;  %v775_v6 = vsel %vm774_vm14, %v1527_v63, %v771_v25  ;;  %vm777_vm0 = vcmp.eq.f32.partialorder %v776_v26, 8.507059e+37 }
 0x220   : > { %839 = vperm.xlu2 %1075, %v660_v20   ;;  %v780_v35 = vsel %vm777_vm0, %v779_v30, %v775_v6 }
 0x221   : > { %v790_v14 = vsel %vm789_vm13, %v1139_v24, %v786_v27  ;;  %v1160_v27 = vld [vmem:[%s1223_s23 + $0x40] sm:$0xff] }
 0x222   : > { %v795_v31 = vsel %vm792_vm15, %v794_v29, %v790_v14  ;;  %v1161_v14 = vld [vmem:[%s1223_s23 + $0x48] sm:$0xff] }
 0x225   : > { %884 = vperm.xlu1 %1073, %v795_v31   ;;  %v1162_v31 = vld [vmem:[%s1223_s23 + $0xf0] sm:$0xff] }
 0x228   : > { %879 = vperm.xlu2 %1075, %v780_v35  }
 0x24f   : > { %v820_v19 = vpop.permute.xlu2 %819 }
 0x250   : > { %v894_v63 = vmul.f32 %v820_v19, %v1254_v40  ;;  %v895_v10 = vmul.f32 %v820_v19, %v1257_v41  ;;  %v1163_v19 = vld [vmem:[%s1223_s23 + $0xf8] sm:$0xff] }
 0x252   : > { %926 = vst [vmem:[%s1715_s21 + $0x10] sm:$0xff] %v894_v63 }
 0x253   : > { %927 = vst [vmem:[%s1715_s21 + $0x18] sm:$0xff] %v895_v10 }
 0x25c   : > { %v850_v37 = vpop.permute.xlu2 %849 }
 0x25d   : > { %v906_v39 = vmul.f32 %v1140_v38, %v850_v37  ;;  %v907_v43 = vmul.f32 %v1141_v42, %v850_v37  ;;  %v1164_v37 = vld [vmem:[%s1223_s23 + $0xb0] sm:$0xff] }
 0x25f   : > { %v815_v44 = vpop.permute.xlu1 %814  ;;  %938 = vst [vmem:[%s1715_s21 + $0x70] sm:$0xff] %v906_v39  ;;  %v1165_v39 = vld [vmem:[%s1223_s23 + $0xb8] sm:$0xff] }
 0x260   : > { %v892_v47 = vmul.f32 %v815_v44, %v1262_v45  ;;  %v893_v40 = vmul.f32 %v815_v44, %v1265_v46  ;;  %939 = vst [vmem:[%s1715_s21 + $0x78] sm:$0xff] %v907_v43  ;;  %v1144_v45 = vld [vmem:[%s1223_s23 + $0xc0] sm:$0xff] }
 0x261   : > { %v1166_v44 = vld [vmem:[%s1223_s23 + $0xe0] sm:$0xff] }
 0x262   : > { %924 = vst [vmem:[%s1715_s21] sm:$0xff] %v892_v47 }
 0x263   : > { %925 = vst [vmem:[%s1715_s21 + $0x8] sm:$0xff] %v893_v40  ;;  %v1167_v40 = vld [vmem:[%s1223_s23 + $0xe8] sm:$0xff] }
 0x265   : > { %v830_v41 = vpop.permute.xlu2 %829 }
 0x266   : > { %v898_v58 = vmul.f32 %v1142_v16, %v830_v41  ;;  %v899_v50 = vmul.f32 %v1143_v49, %v830_v41 }
 0x268   : > { %930 = vst [vmem:[%s1715_s21 + $0x30] sm:$0xff] %v898_v58 }
 0x269   : > { %v875_v34 = vpop.permute.xlu0 %874  ;;  %931 = vst [vmem:[%s1715_s21 + $0x38] sm:$0xff] %v899_v50  ;;  %v845_v52 = vpop.permute.xlu1 %844 }
 0x26a   : > { %v916_v46 = vmul.f32 %v1144_v45, %v875_v34  ;;  %v917_v36 = vmul.f32 %v1145_v51, %v875_v34  ;;  %v904_v32 = vmul.f32 %v1146_v54, %v845_v52  ;;  %v905_v33 = vmul.f32 %v1147_v55, %v845_v52 }
 0x26c   : > { %948 = vst [vmem:[%s1715_s21 + $0xc0] sm:$0xff] %v916_v46 }
 0x26d   : > { %949 = vst [vmem:[%s1715_s21 + $0xc8] sm:$0xff] %v917_v36 }
 0x26e   : > { %936 = vst [vmem:[%s1715_s21 + $0x60] sm:$0xff] %v904_v32 }
 0x26f   : > { %937 = vst [vmem:[%s1715_s21 + $0x68] sm:$0xff] %v905_v33 }
 0x271   : > { %v825_v59 = vpop.permute.xlu0 %824 }
 0x272   : > { %v896_v60 = vmul.f32 %v1148_v28, %v825_v59  ;;  %v897_v62 = vmul.f32 %v1149_v61, %v825_v59  ;;  %v865_v57 = vpop.permute.xlu2 %864 }
 0x273   : > { %v912_v2 = vmul.f32 %v1150_v1, %v865_v57  ;;  %v913_v24 = vmul.f32 %v1151_v3, %v865_v57 }
 0x274   : > { %928 = vst [vmem:[%s1715_s21 + $0x20] sm:$0xff] %v896_v60 }
 0x275   : > { %929 = vst [vmem:[%s1715_s21 + $0x28] sm:$0xff] %v897_v62 }
 0x276   : > { %944 = vst [vmem:[%s1715_s21 + $0xa0] sm:$0xff] %v912_v2 }
 0x277   : > { %945 = vst [vmem:[%s1715_s21 + $0xa8] sm:$0xff] %v913_v24 }
 0x279   : > { %v855_v56 = vpop.permute.xlu1 %854 }
 0x27a   : > { %v908_v5 = vmul.f32 %v1152_v4, %v855_v56  ;;  %v909_v8 = vmul.f32 %v1153_v7, %v855_v56  ;;  %v840_v9 = vpop.permute.xlu2 %839 }
 0x27b   : > { %v902_v12 = vmul.f32 %v1154_v11, %v840_v9  ;;  %v903_v13 = vmul.f32 %v1155_v53, %v840_v9 }
 0x27c   : > { %940 = vst [vmem:[%s1715_s21 + $0x80] sm:$0xff] %v908_v5 }
 0x27d   : > { %941 = vst [vmem:[%s1715_s21 + $0x88] sm:$0xff] %v909_v8 }
 0x27e   : > { %934 = vst [vmem:[%s1715_s21 + $0x50] sm:$0xff] %v902_v12 }
 0x27f   : > { %935 = vst [vmem:[%s1715_s21 + $0x58] sm:$0xff] %v903_v13 }
 0x280   : > { %v860_v15 = vpop.permute.xlu0 %859 }
 0x281   : > { %v910_v48 = vmul.f32 %v1156_v17, %v860_v15  ;;  %v911_v0 = vmul.f32 %v1157_v18, %v860_v15 }
 0x282   : > { %v880_v20 = vpop.permute.xlu2 %879 }
 0x283   : > { %942 = vst [vmem:[%s1715_s21 + $0x90] sm:$0xff] %v910_v48  ;;  %v918_v21 = vmul.f32 %v1158_v22, %v880_v20  ;;  %v919_v25 = vmul.f32 %v1159_v23, %v880_v20 }
 0x284   : > { %v835_v26 = vpop.permute.xlu1 %834  ;;  %943 = vst [vmem:[%s1715_s21 + $0x98] sm:$0xff] %v911_v0 }
 0x285   : > { %v900_v29 = vmul.f32 %v1160_v27, %v835_v26  ;;  %v901_v30 = vmul.f32 %v1161_v14, %v835_v26  ;;  %950 = vst [vmem:[%s1715_s21 + $0xd0] sm:$0xff] %v918_v21 }
 0x286   : > { %951 = vst [vmem:[%s1715_s21 + $0xd8] sm:$0xff] %v919_v25 }
 0x287   : > { %932 = vst [vmem:[%s1715_s21 + $0x40] sm:$0xff] %v900_v29 }
 0x288   : > { %933 = vst [vmem:[%s1715_s21 + $0x48] sm:$0xff] %v901_v30  ;;  %v890_v6 = vpop.permute.xlu0 %889 }
 0x289   : > { %v922_v35 = vmul.f32 %v1162_v31, %v890_v6  ;;  %v923_v63 = vmul.f32 %v1163_v19, %v890_v6 }
 0x28b   : > { %954 = vst [vmem:[%s1715_s21 + $0xf0] sm:$0xff] %v922_v35 }
 0x28c   : > { %955 = vst [vmem:[%s1715_s21 + $0xf8] sm:$0xff] %v923_v63 }
 0x28f   : > { %v870_v10 = vpop.permute.xlu1 %869 }
 0x290   : > { %v914_v38 = vmul.f32 %v1164_v37, %v870_v10  ;;  %v915_v42 = vmul.f32 %v1165_v39, %v870_v10 }
 0x292   : > { %946 = vst [vmem:[%s1715_s21 + $0xb0] sm:$0xff] %v914_v38 }
 0x293   : > { %947 = vst [vmem:[%s1715_s21 + $0xb8] sm:$0xff] %v915_v42 }
 0x297   : > { %v885_v43 = vpop.permute.xlu1 %884 }
 0x298   : > { %v920_v47 = vmul.f32 %v1166_v44, %v885_v43  ;;  %v921_v41 = vmul.f32 %v1167_v40, %v885_v43 }
 0x29a   : > { %952 = vst [vmem:[%s1715_s21 + $0xe0] sm:$0xff] %v920_v47 }
 0x29b   : > { %953 = vst [vmem:[%s1715_s21 + $0xe8] sm:$0xff] %v921_v41 }
 0x29c PF: > { %s15_s18 = sadd.s32 1, %s1174_s18  }
 0x29d   : > { %p12_p4 = scmp.ge.s32.totalorder %s15_s18, 4  }
 0x29f   :  { %14 = sbr.rel (!%p12_p4) target bundleno = 1 (0x1), region = 70 }

</bundles_post_ra>
